<compile_context>
chip_gen: v6e
topology: v6e:2x2x1
jax: 0.10.0
libtpu: 0.0.40
codegen_flags: <defaults>
</compile_context>

<pallas_src>
import functools

import jax
import jax.numpy as jnp
from jax.experimental import pallas as pl
from jax.experimental.pallas import tpu as pltpu

NEG_SLOPE = 0.01       # nn.LeakyReLU default
BN_EPS = 1e-5          # nn.BatchNorm3d default
LANE_TILE_CAP = 512    # keep the vreg-live activation block <= 512 lanes


def _pass_kernel(x_ref, a_ref, scale_ref, shift_ref, out_ref, *, num_apply, emit_stats):
    """One grid step of pass `num_apply`.

    x_ref:     (CT, St)     activation tile (one batch element, St spatial lanes)
    a_ref:     (L, CT, CT)  banded causal-conv matrices (resident)
    scale_ref: (L, CT, 1)   per-row BN scale  (valid for the first num_apply layers)
    shift_ref: (L, CT, 1)   per-row BN shift
    out_ref:   (2*CT, 1) per-tile [sum(y); sum(y*y)] partials if emit_stats,
               else (CT, St) final output tile.
    """
    h = x_ref[...].astype(jnp.float32)          # upcast right after load (v5e: no bf16 VALU)
    for l in range(num_apply):                  # static unroll over completed layers
        y = jnp.dot(a_ref[l], h, preferred_element_type=jnp.float32)   # causal conv (MXU)
        z = y * scale_ref[l] + shift_ref[l]                            # fused BN affine
        h = jnp.maximum(z, NEG_SLOPE * z)                              # LeakyReLU (slope<1)
    if emit_stats:
        # Layer `num_apply`'s conv output; emit per-row sums for its batch statistics.
        y = jnp.dot(a_ref[num_apply], h, preferred_element_type=jnp.float32)
        ysq = jnp.concatenate([y, y * y], axis=0)            # (2*CT, St): one reduce chain
        out_ref[...] = jnp.sum(ysq, axis=1, keepdims=True)   # (2*CT, 1) partial sums
    else:
        out_ref[...] = h.astype(out_ref.dtype)               # lane-dense final store


def build_band_matrices(conv_w, seq_len):
    """conv_w: (L, Cout, Cin, K) temporal taps of the Conv3d weight (out,in,K,1,1).
    Returns (L, Cout*T, Cin*T) banded matrices implementing the causal conv
    (padding = K-1 in front, cross-correlation, trailing padded outputs sliced off)."""
    L, Co, Ci, K = conv_w.shape
    T = seq_len
    t = jnp.arange(T)
    diff = t[:, None] - t[None, :]                 # t_out - t_in
    valid = (diff >= 0) & (diff < K)
    k_idx = jnp.clip(K - 1 - diff, 0, K - 1)       # cross-correlation tap index
    w_exp = conv_w[:, :, :, k_idx]                 # (L, Co, Ci, Tout, Tin)
    a = jnp.where(valid[None, None, None], w_exp, 0.0)
    a = a.transpose(0, 1, 3, 2, 4).reshape(L, Co * T, Ci * T)
    return a.astype(jnp.float32)


def _pick_lane_tile(hw, cap=LANE_TILE_CAP):
    """Largest lane tile <= cap that divides hw and is a multiple of 128; else full hw."""
    if hw <= cap:
        return hw
    for t in range(cap, 0, -128):
        if t % 128 == 0 and hw % t == 0:
            return t
    return hw


def temporal_causal_block(x, conv_w, gamma, beta):
    """x: (N, C, T, H, W) float NCDHW as in PyTorch.  conv_w: (L, Cout, Cin, K) temporal
    taps.  gamma/beta: (L, C) BatchNorm3d affine params.  Returns (N, C, T, H, W)."""
    N, C, T, H, Wsp = x.shape
    L = conv_w.shape[0]
    HW = H * Wsp
    CT = C * T
    S_TILE = _pick_lane_tile(HW)
    n_s = HW // S_TILE if HW % S_TILE == 0 else 1
    if n_s * S_TILE != HW:
        S_TILE, n_s = HW, 1

    a = build_band_matrices(conv_w, T)             # (L, CT, CT)

    # (N, C, T, H, W) -> (N, C*T, H*W): contiguous collapse, no transpose / HBM pass.
    x3 = x.reshape(N, CT, HW)
    io_dtype = x3.dtype
    itemsize = jnp.dtype(io_dtype).itemsize

    grid = (N, n_s)
    x_spec = pl.BlockSpec((None, CT, S_TILE), lambda n, s: (n, 0, s))
    a_spec = pl.BlockSpec((L, CT, CT), lambda n, s: (0, 0, 0))     # resident across grid
    scale_spec = pl.BlockSpec((L, CT, 1), lambda n, s: (0, 0, 0))  # resident
    shift_spec = pl.BlockSpec((L, CT, 1), lambda n, s: (0, 0, 0))  # resident
    compiler_params = pltpu.CompilerParams(
        dimension_semantics=("parallel", "parallel"),   # v7x megacore can shard the grid
        vmem_limit_bytes=32 * 1024 * 1024,              # explicit; tiles fit v7x's 64 MiB
    )

    bn_count = N * T * HW                              # elements per channel for BN stats
    scale_rows = [jnp.ones((CT, 1), jnp.float32) for _ in range(L)]   # placeholders
    shift_rows = [jnp.zeros((CT, 1), jnp.float32) for _ in range(L)]

    out3 = None
    for p in range(L + 1):
        emit_stats = p < L
        num_apply = p if emit_stats else L
        scale_arr = jnp.stack(scale_rows)              # (L, CT, 1)
        shift_arr = jnp.stack(shift_rows)

        if emit_stats:
            out_shape = jax.ShapeDtypeStruct((N, n_s, 2 * CT, 1), jnp.float32)
            out_spec = pl.BlockSpec((None, None, 2 * CT, 1), lambda n, s: (n, s, 0, 0))
            bytes_accessed = N * CT * HW * itemsize + N * n_s * 2 * CT * 4
        else:
            out_shape = jax.ShapeDtypeStruct((N, CT, HW), io_dtype)
            out_spec = pl.BlockSpec((None, CT, S_TILE), lambda n, s: (n, 0, s))
            bytes_accessed = 2 * N * CT * HW * itemsize
        n_mm = num_apply + (1 if emit_stats else 0)
        flops = 2 * CT * CT * HW * N * n_mm + 6 * CT * HW * N * max(num_apply, 1)

        kern = functools.partial(_pass_kernel, num_apply=num_apply, emit_stats=emit_stats)
        result = pl.pallas_call(
            kern,
            out_shape=out_shape,
            grid=grid,
            in_specs=[x_spec, a_spec, scale_spec, shift_spec],
            out_specs=out_spec,
            compiler_params=compiler_params,
            cost_estimate=pl.CostEstimate(
                flops=int(flops), transcendentals=0, bytes_accessed=int(bytes_accessed)),
        )(x3, a, scale_arr, shift_arr)

        if emit_stats:
            # Tiny XLA-side reduction of the per-tile partials -> per-channel scale/shift.
            tot = jnp.sum(result, axis=(0, 1))[:, 0]                     # (2*CT,)
            mean_c = tot[:CT].reshape(C, T).sum(axis=1) / bn_count       # (C,)
            msq_c = tot[CT:].reshape(C, T).sum(axis=1) / bn_count        # (C,)
            # TODO(synk): switch to a centered / compensated variance for very large
            # N*T*H*W (E[y^2]-E[y]^2 in f32 can cancel at production scale).
            var_c = jnp.maximum(msq_c - mean_c * mean_c, 0.0)
            inv_c = jax.lax.rsqrt(var_c + BN_EPS)
            sc_c = inv_c * gamma[p].astype(jnp.float32)
            sh_c = beta[p].astype(jnp.float32) - mean_c * sc_c
            scale_rows[p] = jnp.repeat(sc_c, T).reshape(CT, 1)
            shift_rows[p] = jnp.repeat(sh_c, T).reshape(CT, 1)
        else:
            out3 = result

    return out3.reshape(N, C, T, H, Wsp)               # free reshape back to NCDHW


def reference(x, conv_w, gamma, beta):
    """Independent pure-JAX reference mirroring the PyTorch forward."""
    L, Co, Ci, K = conv_w.shape
    N, C, T, H, Wsp = x.shape
    h = x.astype(jnp.float32)
    for l in range(L):
        w = conv_w[l]
        y = jnp.zeros((N, Co, T, H, Wsp), jnp.float32)
        for k in range(K):
            shift = K - 1 - k
            x_sh = jnp.pad(h, ((0, 0), (0, 0), (shift, 0), (0, 0), (0, 0)))[:, :, :T]
            y = y + jnp.einsum('oc,ncthw->nothw', w[:, :, k], x_sh)
        m = jnp.mean(y, axis=(0, 2, 3, 4), keepdims=True)
        var = jnp.mean((y - m) ** 2, axis=(0, 2, 3, 4), keepdims=True)
        g = gamma[l].reshape(1, Co, 1, 1, 1)
        b = beta[l].reshape(1, Co, 1, 1, 1)
        z = (y - m) * jax.lax.rsqrt(var + BN_EPS) * g + b
        h = jnp.where(z >= 0, z, NEG_SLOPE * z)
    return h


if __name__ == "__main__":
    # Module config: num_layers=2, kernel_size=3 -> temporal kernel (3,1,1),
    # in_channels=out_channels=4 (no channel increase), dropout_rate=0.0.
    N, C, T, H, Wsp = 2, 4, 8, 16, 16
    L, K = 2, 3

    key = jax.random.PRNGKey(0)
    kx, kw, kg, kb = jax.random.split(key, 4)
    x = jax.random.normal(kx, (N, C, T, H, Wsp), jnp.float32)
    # Conv3d weight shape is (out, in, K, 1, 1); we keep the temporal taps (out, in, K).
    conv_w = 0.3 * jax.random.normal(kw, (L, C, C, K), jnp.float32)
    # BatchNorm affine params (deterministic, non-trivial to exercise the math).
    gamma = 1.0 + 0.1 * jax.random.normal(kg, (L, C), jnp.float32)
    beta = 0.1 * jax.random.normal(kb, (L, C), jnp.float32)

    fwd = jax.jit(temporal_causal_block)
    out = jax.block_until_ready(fwd(x, conv_w, gamma, beta))

    ref = reference(x, conv_w, gamma, beta)
    err = float(jnp.max(jnp.abs(out - ref)))
    if not jnp.allclose(out, ref, atol=2e-4, rtol=2e-4):
        raise AssertionError(f"kernel mismatch vs reference: max abs err {err}")
    print("KERNEL_OK")
</pallas_src>

<mosaic_0001>
module attributes {stable_mosaic.version = 11 : i64} {
  func.func @_pass_kernel(%arg0: i32, %arg1: i32, %arg2: memref<1x32x256xf32, #tpu.memory_space<vmem>>, %arg3: memref<2x32x32xf32, #tpu.memory_space<vmem>>, %arg4: memref<2x32x1xf32, #tpu.memory_space<vmem>>, %arg5: memref<2x32x1xf32, #tpu.memory_space<vmem>>, %arg6: memref<1x1x64x1xf32, #tpu.memory_space<vmem>>) attributes {dimension_semantics = [#tpu.dimension_semantics<parallel>, #tpu.dimension_semantics<parallel>], iteration_bounds = array<i64: 2, 1>, scalar_prefetch = 0 : i64, scratch_operands = 0 : i64, tpu.core_type = #tpu.core_type<tc>, window_params = [{transform_indices = @transform_0, window_bounds = array<i64: 1, 32, 256>}, {pipeline_mode = #tpu.pipeline_mode<synchronous>, transform_indices = @transform_1, window_bounds = array<i64: 2, 32, 32>}, {pipeline_mode = #tpu.pipeline_mode<synchronous>, transform_indices = @transform_2, window_bounds = array<i64: 2, 32, 1>}, {pipeline_mode = #tpu.pipeline_mode<synchronous>, transform_indices = @transform_3, window_bounds = array<i64: 2, 32, 1>}, {transform_indices = @transform_4, window_bounds = array<i64: 1, 1, 64, 1>}]} {
    %c0 = arith.constant 0 : index
    %c0_0 = arith.constant 0 : index
    %c0_1 = arith.constant 0 : index
    %0 = vector.load %arg2[%c0, %c0_0, %c0_1] : memref<1x32x256xf32, #tpu.memory_space<vmem>>, vector<1x32x256xf32>
    %1 = vector.shape_cast %0 : vector<1x32x256xf32> to vector<32x256xf32>
    %c0_2 = arith.constant 0 : index
    %c0_3 = arith.constant 0 : index
    %c0_4 = arith.constant 0 : index
    %2 = vector.load %arg3[%c0_2, %c0_3, %c0_4] : memref<2x32x32xf32, #tpu.memory_space<vmem>>, vector<1x32x32xf32>
    %3 = vector.shape_cast %2 : vector<1x32x32xf32> to vector<32x32xf32>
    %cst = arith.constant dense<0.000000e+00> : vector<32x256xf32>
    %4 = tpu.matmul %3, %1, %cst {dimension_numbers = #tpu.dot_dimension_numbers<[1], [0], [0], [1], [0, 0, 1, 1], [], []>} : vector<32x32xf32>, vector<32x256xf32>, vector<32x256xf32> -> vector<32x256xf32>
    %5 = arith.mulf %4, %4 : vector<32x256xf32>
    %6 = tpu.concatenate %4, %5 in 0 : vector<32x256xf32>, vector<32x256xf32> -> vector<64x256xf32>
    %cst_5 = arith.constant dense<0.000000e+00> : vector<64xf32>
    %7 = vector.multi_reduction <add>, %6, %cst_5 [1] : vector<64x256xf32> to vector<64xf32>
    %8 = vector.shape_cast %7 : vector<64xf32> to vector<64x1xf32>
    %c0_6 = arith.constant 0 : index
    %c0_7 = arith.constant 0 : index
    %c0_8 = arith.constant 0 : index
    %c0_9 = arith.constant 0 : index
    %9 = vector.load %arg6[%c0_6, %c0_7, %c0_8, %c0_9] : memref<1x1x64x1xf32, #tpu.memory_space<vmem>>, vector<1x1x64x1xf32>
    %10 = vector.shape_cast %9 : vector<1x1x64x1xf32> to vector<64x1xf32>
    %11 = vector.shape_cast %8 : vector<64x1xf32> to vector<1x1x64x1xf32>
    tpu.vector_store %arg6[%c0_6, %c0_7, %c0_8, %c0_9], %11 {strides = array<i32>} : memref<1x1x64x1xf32, #tpu.memory_space<vmem>>, vector<1x1x64x1xf32>,
    return
  }
  func.func @transform_0(%arg0: i32, %arg1: i32) -> (i32, i32, i32) {
    %c0_i32 = arith.constant 0 : i32
    %c0_i32_0 = arith.constant 0 : i32
    return %arg0, %c0_i32, %arg1 : i32, i32, i32
  }
  func.func @transform_1(%arg0: i32, %arg1: i32) -> (i32, i32, i32) {
    %c0_i32 = arith.constant 0 : i32
    %c0_i32_0 = arith.constant 0 : i32
    %c0_i32_1 = arith.constant 0 : i32
    %c0_i32_2 = arith.constant 0 : i32
    return %c0_i32, %c0_i32_0, %c0_i32_1 : i32, i32, i32
  }
  func.func @transform_2(%arg0: i32, %arg1: i32) -> (i32, i32, i32) {
    %c0_i32 = arith.constant 0 : i32
    %c0_i32_0 = arith.constant 0 : i32
    %c0_i32_1 = arith.constant 0 : i32
    %c0_i32_2 = arith.constant 0 : i32
    return %c0_i32, %c0_i32_0, %c0_i32_1 : i32, i32, i32
  }
  func.func @transform_3(%arg0: i32, %arg1: i32) -> (i32, i32, i32) {
    %c0_i32 = arith.constant 0 : i32
    %c0_i32_0 = arith.constant 0 : i32
    %c0_i32_1 = arith.constant 0 : i32
    %c0_i32_2 = arith.constant 0 : i32
    return %c0_i32, %c0_i32_0, %c0_i32_1 : i32, i32, i32
  }
  func.func @transform_4(%arg0: i32, %arg1: i32) -> (i32, i32, i32, i32) {
    %c0_i32 = arith.constant 0 : i32
    %c0_i32_0 = arith.constant 0 : i32
    %c0_i32_1 = arith.constant 0 : i32
    return %arg0, %arg1, %c0_i32, %c0_i32_0 : i32, i32, i32, i32
  }
}

module attributes {stable_mosaic.version = 11 : i64} {
  func.func @_pass_kernel(%arg0: i32, %arg1: i32, %arg2: memref<1x32x256xf32, #tpu.memory_space<vmem>>, %arg3: memref<2x32x32xf32, #tpu.memory_space<vmem>>, %arg4: memref<2x32x1xf32, #tpu.memory_space<vmem>>, %arg5: memref<2x32x1xf32, #tpu.memory_space<vmem>>, %arg6: memref<1x1x64x1xf32, #tpu.memory_space<vmem>>) attributes {dimension_semantics = [#tpu.dimension_semantics<parallel>, #tpu.dimension_semantics<parallel>], iteration_bounds = array<i64: 2, 1>, scalar_prefetch = 0 : i64, scratch_operands = 0 : i64, tpu.core_type = #tpu.core_type<tc>, window_params = [{transform_indices = @transform_0, window_bounds = array<i64: 1, 32, 256>}, {pipeline_mode = #tpu.pipeline_mode<synchronous>, transform_indices = @transform_1, window_bounds = array<i64: 2, 32, 32>}, {pipeline_mode = #tpu.pipeline_mode<synchronous>, transform_indices = @transform_2, window_bounds = array<i64: 2, 32, 1>}, {pipeline_mode = #tpu.pipeline_mode<synchronous>, transform_indices = @transform_3, window_bounds = array<i64: 2, 32, 1>}, {transform_indices = @transform_4, window_bounds = array<i64: 1, 1, 64, 1>}]} {
    %c0 = arith.constant 0 : index
    %c0_0 = arith.constant 0 : index
    %c0_1 = arith.constant 0 : index
    %0 = vector.load %arg2[%c0, %c0_0, %c0_1] : memref<1x32x256xf32, #tpu.memory_space<vmem>>, vector<1x32x256xf32>
    %1 = vector.shape_cast %0 : vector<1x32x256xf32> to vector<32x256xf32>
    %c0_2 = arith.constant 0 : index
    %c0_3 = arith.constant 0 : index
    %c0_4 = arith.constant 0 : index
    %2 = vector.load %arg3[%c0_2, %c0_3, %c0_4] : memref<2x32x32xf32, #tpu.memory_space<vmem>>, vector<1x32x32xf32>
    %3 = vector.shape_cast %2 : vector<1x32x32xf32> to vector<32x32xf32>
    %cst = arith.constant dense<0.000000e+00> : vector<32x256xf32>
    %4 = tpu.matmul %3, %1, %cst {dimension_numbers = #tpu.dot_dimension_numbers<[1], [0], [0], [1], [0, 0, 1, 1], [], []>} : vector<32x32xf32>, vector<32x256xf32>, vector<32x256xf32> -> vector<32x256xf32>
    %c0_5 = arith.constant 0 : index
    %c0_6 = arith.constant 0 : index
    %c0_7 = arith.constant 0 : index
    %5 = vector.load %arg4[%c0_5, %c0_6, %c0_7] : memref<2x32x1xf32, #tpu.memory_space<vmem>>, vector<1x32x1xf32>
    %6 = vector.shape_cast %5 : vector<1x32x1xf32> to vector<32x1xf32>
    %7 = vector.broadcast %6 : vector<32x1xf32> to vector<32x256xf32>
    %8 = arith.mulf %4, %7 : vector<32x256xf32>
    %c0_8 = arith.constant 0 : index
    %c0_9 = arith.constant 0 : index
    %c0_10 = arith.constant 0 : index
    %9 = vector.load %arg5[%c0_8, %c0_9, %c0_10] : memref<2x32x1xf32, #tpu.memory_space<vmem>>, vector<1x32x1xf32>
    %10 = vector.shape_cast %9 : vector<1x32x1xf32> to vector<32x1xf32>
    %11 = vector.broadcast %10 : vector<32x1xf32> to vector<32x256xf32>
    %12 = arith.addf %8, %11 : vector<32x256xf32>
    %cst_11 = arith.constant 0.00999999977 : f32
    %13 = vector.broadcast %cst_11 : f32 to vector<32x256xf32>
    %14 = arith.mulf %13, %12 : vector<32x256xf32>
    %15 = arith.maximumf %12, %14 : vector<32x256xf32>
    %c1 = arith.constant 1 : index
    %c0_12 = arith.constant 0 : index
    %c0_13 = arith.constant 0 : index
    %16 = vector.load %arg3[%c1, %c0_12, %c0_13] : memref<2x32x32xf32, #tpu.memory_space<vmem>>, vector<1x32x32xf32>
    %17 = vector.shape_cast %16 : vector<1x32x32xf32> to vector<32x32xf32>
    %cst_14 = arith.constant dense<0.000000e+00> : vector<32x256xf32>
    %18 = tpu.matmul %17, %15, %cst_14 {dimension_numbers = #tpu.dot_dimension_numbers<[1], [0], [0], [1], [0, 0, 1, 1], [], []>} : vector<32x32xf32>, vector<32x256xf32>, vector<32x256xf32> -> vector<32x256xf32>
    %19 = arith.mulf %18, %18 : vector<32x256xf32>
    %20 = tpu.concatenate %18, %19 in 0 : vector<32x256xf32>, vector<32x256xf32> -> vector<64x256xf32>
    %cst_15 = arith.constant dense<0.000000e+00> : vector<64xf32>
    %21 = vector.multi_reduction <add>, %20, %cst_15 [1] : vector<64x256xf32> to vector<64xf32>
    %22 = vector.shape_cast %21 : vector<64xf32> to vector<64x1xf32>
    %c0_16 = arith.constant 0 : index
    %c0_17 = arith.constant 0 : index
    %c0_18 = arith.constant 0 : index
    %c0_19 = arith.constant 0 : index
    %23 = vector.load %arg6[%c0_16, %c0_17, %c0_18, %c0_19] : memref<1x1x64x1xf32, #tpu.memory_space<vmem>>, vector<1x1x64x1xf32>
    %24 = vector.shape_cast %23 : vector<1x1x64x1xf32> to vector<64x1xf32>
    %25 = vector.shape_cast %22 : vector<64x1xf32> to vector<1x1x64x1xf32>
    tpu.vector_store %arg6[%c0_16, %c0_17, %c0_18, %c0_19], %25 {strides = array<i32>} : memref<1x1x64x1xf32, #tpu.memory_space<vmem>>, vector<1x1x64x1xf32>,
    return
  }
  func.func @transform_0(%arg0: i32, %arg1: i32) -> (i32, i32, i32) {
    %c0_i32 = arith.constant 0 : i32
    %c0_i32_0 = arith.constant 0 : i32
    return %arg0, %c0_i32, %arg1 : i32, i32, i32
  }
  func.func @transform_1(%arg0: i32, %arg1: i32) -> (i32, i32, i32) {
    %c0_i32 = arith.constant 0 : i32
    %c0_i32_0 = arith.constant 0 : i32
    %c0_i32_1 = arith.constant 0 : i32
    %c0_i32_2 = arith.constant 0 : i32
    return %c0_i32, %c0_i32_0, %c0_i32_1 : i32, i32, i32
  }
  func.func @transform_2(%arg0: i32, %arg1: i32) -> (i32, i32, i32) {
    %c0_i32 = arith.constant 0 : i32
    %c0_i32_0 = arith.constant 0 : i32
    %c0_i32_1 = arith.constant 0 : i32
    %c0_i32_2 = arith.constant 0 : i32
    return %c0_i32, %c0_i32_0, %c0_i32_1 : i32, i32, i32
  }
  func.func @transform_3(%arg0: i32, %arg1: i32) -> (i32, i32, i32) {
    %c0_i32 = arith.constant 0 : i32
    %c0_i32_0 = arith.constant 0 : i32
    %c0_i32_1 = arith.constant 0 : i32
    %c0_i32_2 = arith.constant 0 : i32
    return %c0_i32, %c0_i32_0, %c0_i32_1 : i32, i32, i32
  }
  func.func @transform_4(%arg0: i32, %arg1: i32) -> (i32, i32, i32, i32) {
    %c0_i32 = arith.constant 0 : i32
    %c0_i32_0 = arith.constant 0 : i32
    %c0_i32_1 = arith.constant 0 : i32
    return %arg0, %arg1, %c0_i32, %c0_i32_0 : i32, i32, i32, i32
  }
}

module attributes {stable_mosaic.version = 11 : i64} {
  func.func @_pass_kernel(%arg0: i32, %arg1: i32, %arg2: memref<1x32x256xf32, #tpu.memory_space<vmem>>, %arg3: memref<2x32x32xf32, #tpu.memory_space<vmem>>, %arg4: memref<2x32x1xf32, #tpu.memory_space<vmem>>, %arg5: memref<2x32x1xf32, #tpu.memory_space<vmem>>, %arg6: memref<1x32x256xf32, #tpu.memory_space<vmem>>) attributes {dimension_semantics = [#tpu.dimension_semantics<parallel>, #tpu.dimension_semantics<parallel>], iteration_bounds = array<i64: 2, 1>, scalar_prefetch = 0 : i64, scratch_operands = 0 : i64, tpu.core_type = #tpu.core_type<tc>, window_params = [{transform_indices = @transform_0, window_bounds = array<i64: 1, 32, 256>}, {pipeline_mode = #tpu.pipeline_mode<synchronous>, transform_indices = @transform_1, window_bounds = array<i64: 2, 32, 32>}, {pipeline_mode = #tpu.pipeline_mode<synchronous>, transform_indices = @transform_2, window_bounds = array<i64: 2, 32, 1>}, {pipeline_mode = #tpu.pipeline_mode<synchronous>, transform_indices = @transform_3, window_bounds = array<i64: 2, 32, 1>}, {transform_indices = @transform_4, window_bounds = array<i64: 1, 32, 256>}]} {
    %c0 = arith.constant 0 : index
    %c0_0 = arith.constant 0 : index
    %c0_1 = arith.constant 0 : index
    %0 = vector.load %arg2[%c0, %c0_0, %c0_1] : memref<1x32x256xf32, #tpu.memory_space<vmem>>, vector<1x32x256xf32>
    %1 = vector.shape_cast %0 : vector<1x32x256xf32> to vector<32x256xf32>
    %c0_2 = arith.constant 0 : index
    %c0_3 = arith.constant 0 : index
    %c0_4 = arith.constant 0 : index
    %2 = vector.load %arg3[%c0_2, %c0_3, %c0_4] : memref<2x32x32xf32, #tpu.memory_space<vmem>>, vector<1x32x32xf32>
    %3 = vector.shape_cast %2 : vector<1x32x32xf32> to vector<32x32xf32>
    %cst = arith.constant dense<0.000000e+00> : vector<32x256xf32>
    %4 = tpu.matmul %3, %1, %cst {dimension_numbers = #tpu.dot_dimension_numbers<[1], [0], [0], [1], [0, 0, 1, 1], [], []>} : vector<32x32xf32>, vector<32x256xf32>, vector<32x256xf32> -> vector<32x256xf32>
    %c0_5 = arith.constant 0 : index
    %c0_6 = arith.constant 0 : index
    %c0_7 = arith.constant 0 : index
    %5 = vector.load %arg4[%c0_5, %c0_6, %c0_7] : memref<2x32x1xf32, #tpu.memory_space<vmem>>, vector<1x32x1xf32>
    %6 = vector.shape_cast %5 : vector<1x32x1xf32> to vector<32x1xf32>
    %7 = vector.broadcast %6 : vector<32x1xf32> to vector<32x256xf32>
    %8 = arith.mulf %4, %7 : vector<32x256xf32>
    %c0_8 = arith.constant 0 : index
    %c0_9 = arith.constant 0 : index
    %c0_10 = arith.constant 0 : index
    %9 = vector.load %arg5[%c0_8, %c0_9, %c0_10] : memref<2x32x1xf32, #tpu.memory_space<vmem>>, vector<1x32x1xf32>
    %10 = vector.shape_cast %9 : vector<1x32x1xf32> to vector<32x1xf32>
    %11 = vector.broadcast %10 : vector<32x1xf32> to vector<32x256xf32>
    %12 = arith.addf %8, %11 : vector<32x256xf32>
    %cst_11 = arith.constant 0.00999999977 : f32
    %13 = vector.broadcast %cst_11 : f32 to vector<32x256xf32>
    %14 = arith.mulf %13, %12 : vector<32x256xf32>
    %15 = arith.maximumf %12, %14 : vector<32x256xf32>
    %c1 = arith.constant 1 : index
    %c0_12 = arith.constant 0 : index
    %c0_13 = arith.constant 0 : index
    %16 = vector.load %arg3[%c1, %c0_12, %c0_13] : memref<2x32x32xf32, #tpu.memory_space<vmem>>, vector<1x32x32xf32>
    %17 = vector.shape_cast %16 : vector<1x32x32xf32> to vector<32x32xf32>
    %cst_14 = arith.constant dense<0.000000e+00> : vector<32x256xf32>
    %18 = tpu.matmul %17, %15, %cst_14 {dimension_numbers = #tpu.dot_dimension_numbers<[1], [0], [0], [1], [0, 0, 1, 1], [], []>} : vector<32x32xf32>, vector<32x256xf32>, vector<32x256xf32> -> vector<32x256xf32>
    %c1_15 = arith.constant 1 : index
    %c0_16 = arith.constant 0 : index
    %c0_17 = arith.constant 0 : index
    %19 = vector.load %arg4[%c1_15, %c0_16, %c0_17] : memref<2x32x1xf32, #tpu.memory_space<vmem>>, vector<1x32x1xf32>
    %20 = vector.shape_cast %19 : vector<1x32x1xf32> to vector<32x1xf32>
    %21 = vector.broadcast %20 : vector<32x1xf32> to vector<32x256xf32>
    %22 = arith.mulf %18, %21 : vector<32x256xf32>
    %c1_18 = arith.constant 1 : index
    %c0_19 = arith.constant 0 : index
    %c0_20 = arith.constant 0 : index
    %23 = vector.load %arg5[%c1_18, %c0_19, %c0_20] : memref<2x32x1xf32, #tpu.memory_space<vmem>>, vector<1x32x1xf32>
    %24 = vector.shape_cast %23 : vector<1x32x1xf32> to vector<32x1xf32>
    %25 = vector.broadcast %24 : vector<32x1xf32> to vector<32x256xf32>
    %26 = arith.addf %22, %25 : vector<32x256xf32>
    %cst_21 = arith.constant 0.00999999977 : f32
    %27 = vector.broadcast %cst_21 : f32 to vector<32x256xf32>
    %28 = arith.mulf %27, %26 : vector<32x256xf32>
    %29 = arith.maximumf %26, %28 : vector<32x256xf32>
    %c0_22 = arith.constant 0 : index
    %c0_23 = arith.constant 0 : index
    %c0_24 = arith.constant 0 : index
    %30 = vector.load %arg6[%c0_22, %c0_23, %c0_24] : memref<1x32x256xf32, #tpu.memory_space<vmem>>, vector<1x32x256xf32>
    %31 = vector.shape_cast %30 : vector<1x32x256xf32> to vector<32x256xf32>
    %32 = vector.shape_cast %29 : vector<32x256xf32> to vector<1x32x256xf32>
    tpu.vector_store %arg6[%c0_22, %c0_23, %c0_24], %32 {strides = array<i32>} : memref<1x32x256xf32, #tpu.memory_space<vmem>>, vector<1x32x256xf32>,
    return
  }
  func.func @transform_0(%arg0: i32, %arg1: i32) -> (i32, i32, i32) {
    %c0_i32 = arith.constant 0 : i32
    %c0_i32_0 = arith.constant 0 : i32
    return %arg0, %c0_i32, %arg1 : i32, i32, i32
  }
  func.func @transform_1(%arg0: i32, %arg1: i32) -> (i32, i32, i32) {
    %c0_i32 = arith.constant 0 : i32
    %c0_i32_0 = arith.constant 0 : i32
    %c0_i32_1 = arith.constant 0 : i32
    %c0_i32_2 = arith.constant 0 : i32
    return %c0_i32, %c0_i32_0, %c0_i32_1 : i32, i32, i32
  }
  func.func @transform_2(%arg0: i32, %arg1: i32) -> (i32, i32, i32) {
    %c0_i32 = arith.constant 0 : i32
    %c0_i32_0 = arith.constant 0 : i32
    %c0_i32_1 = arith.constant 0 : i32
    %c0_i32_2 = arith.constant 0 : i32
    return %c0_i32, %c0_i32_0, %c0_i32_1 : i32, i32, i32
  }
  func.func @transform_3(%arg0: i32, %arg1: i32) -> (i32, i32, i32) {
    %c0_i32 = arith.constant 0 : i32
    %c0_i32_0 = arith.constant 0 : i32
    %c0_i32_1 = arith.constant 0 : i32
    %c0_i32_2 = arith.constant 0 : i32
    return %c0_i32, %c0_i32_0, %c0_i32_1 : i32, i32, i32
  }
  func.func @transform_4(%arg0: i32, %arg1: i32) -> (i32, i32, i32) {
    %c0_i32 = arith.constant 0 : i32
    %c0_i32_0 = arith.constant 0 : i32
    return %arg0, %c0_i32, %arg1 : i32, i32, i32
  }
}

</mosaic_0001>

<bundles_post_ra>
// kernel: temporal_causal_block.3
= control target key start
LH: loop header
LB: loop body
LE: loop exit
PB: predicated region body
PF: predicated region fallthrough
CT: control target
= control target key end

     0   :  { %s580_s15 = smov 0   ;;  %s582_s16 = smov 0   ;;  %s640_s0 = inlined_call_operand.vmem [shape: f32[2,32,256], index: 0, kind: input, shape index: {}]   ;;  %s641_s1 = inlined_call_operand.vmem [shape: f32[2,32,32], index: 1, kind: input, shape index: {}]   ;;  %s642_s2 = inlined_call_operand.vmem [shape: f32[2,32,1], index: 2, kind: input, shape index: {}]   ;;  %s643_s3 = inlined_call_operand.vmem [shape: f32[2,32,1], index: 3, kind: input, shape index: {}]   ;;  %s644_s4 = inlined_call_operand.vmem [shape: f32[2,1,64,1], index: 4, kind: output, shape index: {}]  }
   0x1   :  { %s584_s17 = smov 0  }
   0x2 LB: > { %s26_s2 = sadd.s32 1, %s548_s16  ;;  %p484_p0 = scmp.ge.s32.totalorder %s552_s17, 1  ;;  %s552_s17 = sphi %s584_s17, %s14_s17   ;;  %s548_s16 = sphi %s582_s16, %s646_s16   ;;  %s544_s15 = sphi %s580_s15, %s645_s15  }
   0x3   : > { %p28_p1 = scmp.ge.s32.totalorder %s26_s2, 2  ;;  %p183_p2 = scmp.lt.s32.totalorder %s552_s17, 3 }
   0x5   : > { %s648_s2 = smov (%p28_p1, %s26_s2), 0  ;;  %p184_p3 = pnand %p484_p0, %p183_p2 }
   0x6   : > { %p218_p4 = scmp.lt.s32.totalorder (!%p184_p3), %s544_s15, 1 }
   0x7   : > { %187 = sbr.rel (%p184_p3) target bundleno = 372 (0x174), region = 36 }
   0xc   : > { %v554_v0 = vmov 0.0   ;;  %s650_s15 = smov (!%p218_p4, %s544_s15), 1  ;;  %v244_v9 = vld [vmem:[%s641_s1] sm:$0xff]  ;;  %vm248_vm0 = vcmask 261120   ;;  %v246_v10 = vld [vmem:[%s641_s1 + $0x10] sm:$0xff]  ;;  %v245_v11 = vld [vmem:[%s641_s1 + $0x8] sm:$0xff] }
   0xd   : > { %325 = vmatprep.mubr.f32.mxu0 %v554_v0  ;;  %337 = vmatprep.mubr.f32.mxu1 %v554_v0  ;;  %s495_s3 = sshll.u32 %s650_s15, 6  ;;  %v247_v12 = vld [vmem:[%s641_s1 + $0x18] sm:$0xff]  ;;  %vm382_vm1 = vcmask 7168  }
   0xe   : > { %s225_s20 = scalar_lea.vmem %s640_s0, %s495_s3  ;;  %s235_s5 = scalar_lea.vmem %s644_s4, %s495_s3 }
   0xf   : > { %v243_v1 = vld [vmem:[%s225_s20 + $0x38] sm:$0xff]  ;;  %v242_v2 = vld [vmem:[%s225_s20 + $0x30] sm:$0xff]  ;;  %v241_v3 = vld [vmem:[%s225_s20 + $0x28] sm:$0xff] }
  0x10   : > { %285 = vmatprep.subr.mxu0 %v243_v1  ;;  %497 = vmatprep.subr.mxu1 %v243_v1  ;;  %v240_v4 = vld [vmem:[%s225_s20 + $0x20] sm:$0xff]  ;;  %v239_v5 = vld [vmem:[%s225_s20 + $0x18] sm:$0xff]  ;;  %v238_v6 = vld [vmem:[%s225_s20 + $0x10] sm:$0xff] }
  0x11   : > { %286 = vmatpush1.msra.mxu0 %v242_v2  ;;  %501 = vmatpush1.msra.mxu1 %v242_v2  ;;  %v237_v7 = vld [vmem:[%s225_s20 + $0x8] sm:$0xff]  ;;  %v236_v8 = vld [vmem:[%s225_s20] sm:$0xff] }
  0x12   : > { %287 = vmatprep.subr.mxu0 %v241_v3  ;;  %498 = vmatprep.subr.mxu1 %v241_v3 }
  0x13   : > { %288 = vmatpush1.msra.mxu0 %v240_v4  ;;  %502 = vmatpush1.msra.mxu1 %v240_v4 }
  0x14   : > { %289 = vmatprep.subr.mxu0 %v239_v5  ;;  %499 = vmatprep.subr.mxu1 %v239_v5 }
  0x15   : > { %290 = vmatpush1.msra.mxu0 %v238_v6  ;;  %503 = vmatpush1.msra.mxu1 %v238_v6 }
  0x16   : > { %291 = vmatprep.subr.mxu0 %v237_v7  ;;  %500 = vmatprep.subr.mxu1 %v237_v7 }
  0x17   : > { %292 = vmatpush1.msra.mxu0 %v236_v8  ;;  %504 = vmatpush1.msra.mxu1 %v236_v8 }
  0x18   : > { %489 = vmatmul.mubr.msk.f32.vlgmr.msra.gmra.mxu0 %vm248_vm0, %v244_v9  ;;  %491 = vmatmul.mubr.msk.f32.vlgmr.msra.gmra.mxu1 %vm248_vm0, %v246_v10 }
  0x19   : > { %331 = vmatprep.mubr.f32.mxu0 %v554_v0  ;;  %343 = vmatprep.mubr.f32.mxu1 %v554_v0 }
  0x1c   : > { %490 = vmatmul.mubr.msk.f32.gmra.mxu0 %vm248_vm0, %v245_v11  ;;  %492 = vmatmul.mubr.msk.f32.gmra.mxu1 %vm248_vm0, %v247_v12 }
  0xd8   : > { %v327_v13 = vpop.f32.mrf.mxu0  ;;  %v339_v14 = vpop.f32.mrf.mxu1 }
  0xd9   : > { %v350_v22 = vmul.f32 %v327_v13, %v327_v13  ;;  %v354_v33 = vmul.f32 %v339_v14, %v339_v14 }
  0xda   : > { %v329_v15 = vpop.f32.mrf.mxu0  ;;  %v341_v16 = vpop.f32.mrf.mxu1 }
  0xdb   : > { %v351_v17 = vmul.f32 %v329_v15, %v329_v15  ;;  %v364_v18 = vadd.f32 %v341_v16, %v339_v14  ;;  %v358_v19 = vadd.f32 %v329_v15, %v327_v13  ;;  %v355_v29 = vmul.f32 %v341_v16, %v341_v16 }
  0xdc   : > { %v333_v20 = vpop.f32.mrf.mxu0  ;;  %v345_v21 = vpop.f32.mrf.mxu1 }
  0xdd   : > { %365 = vadd.xlane.f32.xlu1 %v364_v18  ;;  %359 = vadd.xlane.f32.xlu0 %v358_v19  ;;  %v352_v25 = vmul.f32 %v333_v20, %v333_v20  ;;  %v370_v28 = vadd.f32 %v351_v17, %v350_v22  ;;  %v356_v34 = vmul.f32 %v345_v21, %v345_v21 }
  0xde   : > { %v335_v23 = vpop.f32.mrf.mxu0  ;;  %v347_v24 = vpop.f32.mrf.mxu1  ;;  %v376_v35 = vadd.f32 %v355_v29, %v354_v33 }
  0xdf   : > { %v353_v26 = vmul.f32 %v335_v23, %v335_v23  ;;  %v367_v27 = vadd.f32 %v347_v24, %v345_v21  ;;  %v361_v30 = vadd.f32 %v335_v23, %v333_v20  ;;  %v357_v31 = vmul.f32 %v347_v24, %v347_v24 }
  0xe1   : > { %368 = vadd.xlane.f32.xlu1 %v367_v27  ;;  %371 = vadd.xlane.f32.xlu0 %v370_v28  ;;  %v373_v32 = vadd.f32 %v353_v26, %v352_v25  ;;  %v379_v36 = vadd.f32 %v357_v31, %v356_v34 }
  0xe5   : > { %362 = vadd.xlane.f32.xlu0 %v361_v30  ;;  %374 = vadd.xlane.f32.xlu1 %v373_v32 }
  0xe9   : > { %377 = vadd.xlane.f32.xlu0 %v376_v35  ;;  %380 = vadd.xlane.f32.xlu1 %v379_v36 }
 0x166   : > { %v366_v37 = vpop.xlane.xlu1 %365  ;;  %v360_v38 = vpop.xlane.xlu0 %359 }
 0x167   : > { %385 = vst.msk [vmem:[%s235_s5 + $0x10] sm:$0xff] %vm382_vm1, %v366_v37  ;;  %383 = vst.msk [vmem:[%s235_s5] sm:$0xff] %vm382_vm1, %v360_v38 }
 0x16a   : > { %v369_v39 = vpop.xlane.xlu1 %368  ;;  %v372_v40 = vpop.xlane.xlu0 %371 }
 0x16b   : > { %386 = vst.msk [vmem:[%s235_s5 + $0x18] sm:$0xff] %vm382_vm1, %v369_v39  ;;  %387 = vst.msk [vmem:[%s235_s5 + $0x20] sm:$0xff] %vm382_vm1, %v372_v40 }
 0x16e   : > { %v363_v41 = vpop.xlane.xlu0 %362  ;;  %v375_v42 = vpop.xlane.xlu1 %374 }
 0x16f   : > { %384 = vst.msk [vmem:[%s235_s5 + $0x8] sm:$0xff] %vm382_vm1, %v363_v41  ;;  %388 = vst.msk [vmem:[%s235_s5 + $0x28] sm:$0xff] %vm382_vm1, %v375_v42 }
 0x172   : > { %v378_v43 = vpop.xlane.xlu0 %377  ;;  %v381_v44 = vpop.xlane.xlu1 %380 }
 0x173   : > { %389 = vst.msk [vmem:[%s235_s5 + $0x30] sm:$0xff] %vm382_vm1, %v378_v43  ;;  %390 = vst.msk [vmem:[%s235_s5 + $0x38] sm:$0xff] %vm382_vm1, %v381_v44 }
 0x174 PF: > { %s14_s17 = sadd.s32 1, %s552_s17   ;;  %s645_s15 = smov %s548_s16 }
 0x175   : > { %p11_p5 = scmp.ge.s32.totalorder %s14_s17, 4   ;;  %s646_s16 = smov %s648_s2 }
 0x177   :  { %13 = sbr.rel (!%p11_p5) target bundleno = 2 (0x2), region = 66 }

// kernel: temporal_causal_block.4
= control target key start
LH: loop header
LB: loop body
LE: loop exit
PB: predicated region body
PF: predicated region fallthrough
CT: control target
= control target key end

     0   :  { %s770_s15 = smov 0   ;;  %s772_s16 = smov 0   ;;  %s882_s0 = inlined_call_operand.vmem [shape: f32[2,32,256], index: 0, kind: input, shape index: {}]   ;;  %s883_s1 = inlined_call_operand.vmem [shape: f32[2,32,32], index: 1, kind: input, shape index: {}]   ;;  %s884_s2 = inlined_call_operand.vmem [shape: f32[2,32,1], index: 2, kind: input, shape index: {}]   ;;  %s885_s3 = inlined_call_operand.vmem [shape: f32[2,32,1], index: 3, kind: input, shape index: {}]   ;;  %s886_s4 = inlined_call_operand.vmem [shape: f32[2,1,64,1], index: 4, kind: output, shape index: {}]  }
   0x1   :  { %s774_s17 = smov 0  }
   0x2 LB: > { %s26_s18 = sadd.s32 1, %s737_s16  ;;  %p670_p0 = scmp.ge.s32.totalorder %s741_s17, 1  ;;  %s741_s17 = sphi %s774_s17, %s14_s17   ;;  %s737_s16 = sphi %s772_s16, %s888_s16   ;;  %s733_s15 = sphi %s770_s15, %s887_s15  }
   0x3   : > { %p28_p1 = scmp.ge.s32.totalorder %s26_s18, 2  ;;  %p183_p2 = scmp.lt.s32.totalorder %s741_s17, 3 }
   0x5   : > { %s890_s18 = smov (%p28_p1, %s26_s18), 0  ;;  %p184_p3 = pnand %p670_p0, %p183_p2 }
   0x6   : > { %p218_p4 = scmp.lt.s32.totalorder (!%p184_p3), %s733_s15, 1 }
   0x7   : > { %187 = sbr.rel (%p184_p3) target bundleno = 603 (0x25b), region = 36 }
   0xc   : > { %v743_v0 = vmov 0.0   ;;  %v385_v1 = vld [vmem:[%s885_s3 + $0x18] sm:$0xff]  ;;  %s892_s15 = smov (!%p218_p4, %s733_s15), 1  ;;  %v744_v3 = vmov 0   ;;  %v351_v4 = vld [vmem:[%s884_s2 + $0x8] sm:$0xff]  ;;  %v352_v5 = vld [vmem:[%s884_s2 + $0x10] sm:$0xff] }
   0xd   : > { %325 = vmatprep.mubr.f32.mxu0 %v743_v0  ;;  %v353_v2 = vld [vmem:[%s884_s2 + $0x18] sm:$0xff]  ;;  %511 = vmatprep.mubr.f32.mxu1 %v743_v0  ;;  %s689_s23 = sshll.u32 %s892_s15, 6  ;;  %v350_v11 = vld [vmem:[%s884_s2] sm:$0xff]  ;;  %v384_v13 = vld [vmem:[%s885_s3 + $0x10] sm:$0xff]  ;;  %vm248_vm0 = vcmask 261120   ;;  %vm568_vm1 = vcmask 7168  }
   0xe   : > { %718 = vset.pattern.permute.xlu1 %v744_v3  ;;  %717 = vset.pattern.permute.xlu0 %v744_v3  ;;  %s225_s28 = scalar_lea.vmem %s882_s0, %s689_s23  ;;  %v244_v16 = vld [vmem:[%s883_s1] sm:$0xff]  ;;  %v383_v18 = vld [vmem:[%s885_s3 + $0x8] sm:$0xff]  ;;  %v246_v20 = vld [vmem:[%s883_s1 + $0x10] sm:$0xff]  ;;  %s235_s10 = scalar_lea.vmem %s886_s4, %s689_s23 }
   0xf   : > { %403 = vperm.xlu1 %718, %v385_v1   ;;  %371 = vperm.xlu0 %717, %v353_v2   ;;  %v243_v6 = vld [vmem:[%s225_s28 + $0x38] sm:$0xff]  ;;  %v242_v7 = vld [vmem:[%s225_s28 + $0x30] sm:$0xff]  ;;  %v241_v8 = vld [vmem:[%s225_s28 + $0x28] sm:$0xff] }
  0x10   : > { %285 = vmatprep.subr.mxu0 %v243_v6  ;;  %v240_v9 = vld [vmem:[%s225_s28 + $0x20] sm:$0xff]  ;;  %v239_v10 = vld [vmem:[%s225_s28 + $0x18] sm:$0xff]  ;;  %v238_v12 = vld [vmem:[%s225_s28 + $0x10] sm:$0xff] }
  0x11   : > { %286 = vmatpush1.msra.mxu0 %v242_v7  ;;  %v237_v14 = vld [vmem:[%s225_s28 + $0x8] sm:$0xff]  ;;  %v236_v15 = vld [vmem:[%s225_s28] sm:$0xff]  ;;  %v247_v21 = vld [vmem:[%s883_s1 + $0x18] sm:$0xff] }
  0x12   : > { %287 = vmatprep.subr.mxu0 %v241_v8  ;;  %v382_v17 = vld [vmem:[%s885_s3] sm:$0xff]  ;;  %v245_v19 = vld [vmem:[%s883_s1 + $0x8] sm:$0xff] }
  0x13   : > { %361 = vperm.xlu1 %718, %v351_v4   ;;  %366 = vperm.xlu0 %717, %v352_v5   ;;  %v679_v7 = vld [vmem:[%s883_s1 + $0x20] sm:$0xff]  ;;  %v680_v8 = vld [vmem:[%s883_s1 + $0x28] sm:$0xff] }
  0x14   : > { %288 = vmatpush1.msra.mxu0 %v240_v9  ;;  %v681_v9 = vld [vmem:[%s883_s1 + $0x30] sm:$0xff] }
  0x15   : > { %289 = vmatprep.subr.mxu0 %v239_v10  ;;  %v682_v10 = vld [vmem:[%s883_s1 + $0x38] sm:$0xff] }
  0x16   : > { %290 = vmatpush1.msra.mxu0 %v238_v12 }
  0x17   : > { %356 = vperm.xlu1 %718, %v350_v11   ;;  %398 = vperm.xlu0 %717, %v384_v13  }
  0x18   : > { %291 = vmatprep.subr.mxu0 %v237_v14 }
  0x19   : > { %292 = vmatpush1.msra.mxu0 %v236_v15 }
  0x1a   : > { %675 = vmatmul.mubr.msk.f32.vlgmr.msra.gmra.mxu0 %vm248_vm0, %v244_v16 }
  0x1b   : > { %388 = vperm.xlu1 %718, %v382_v17   ;;  %331 = vmatprep.mubr.f32.mxu0 %v743_v0 }
  0x1c   : > { %393 = vperm.xlu0 %717, %v383_v18  }
  0x1e   : > { %676 = vmatmul.mubr.msk.f32.gmra.mxu0 %vm248_vm0, %v245_v19 }
  0x1f   : > { %337 = vmatprep.mubr.f32.mxu0 %v743_v0 }
  0x22   : > { %677 = vmatmul.mubr.msk.f32.gmra.mxu0 %vm248_vm0, %v246_v20 }
  0x23   : > { %343 = vmatprep.mubr.f32.mxu0 %v743_v0 }
  0x26   : > { %678 = vmatmul.mubr.msk.f32.gmra.mxu0 %vm248_vm0, %v247_v21 }
  0x8a   : > { %v372_v22 = vpop.permute.xlu0 %371  ;;  %v404_v23 = vpop.permute.xlu1 %403 }
  0x8e   : > { %v367_v26 = vpop.permute.xlu0 %366  ;;  %v362_v28 = vpop.permute.xlu1 %361 }
  0x92   : > { %v399_v31 = vpop.permute.xlu0 %398  ;;  %v357_v33 = vpop.permute.xlu1 %356 }
  0x96   : > { %v389_v48 = vpop.permute.xlu1 %388 }
  0x97   : > { %v394_v42 = vpop.permute.xlu0 %393 }
  0xda   : > { %v327_v24 = vpop.f32.mrf.mxu0 }
  0xdb   : > { %v374_v46 = vmul.f32 %v357_v33, %v327_v24 }
  0xdc   : > { %v329_v25 = vpop.f32.mrf.mxu0 }
  0xdd   : > { %v375_v41 = vmul.f32 %v357_v33, %v329_v25  ;;  %v406_v56 = vadd.f32 %v389_v48, %v374_v46 }
  0xde   : > { %v333_v27 = vpop.f32.mrf.mxu0 }
  0xdf   : > { %v376_v39 = vmul.f32 %v362_v28, %v333_v27  ;;  %v407_v53 = vadd.f32 %v389_v48, %v375_v41  ;;  %v414_v1 = vmul.f32 0.01, %v406_v56 }
  0xe0   : > { %v335_v29 = vpop.f32.mrf.mxu0 }
  0xe1   : > { %v377_v37 = vmul.f32 %v362_v28, %v335_v29  ;;  %v408_v51 = vadd.f32 %v394_v42, %v376_v39  ;;  %v415_v62 = vmul.f32 0.01, %v407_v53  ;;  %v422_v6 = vmax.f32 %v406_v56, %v414_v1 }
  0xe2   : > { %v339_v30 = vpop.f32.mrf.mxu0 }
  0xe3   : > { %v378_v35 = vmul.f32 %v367_v26, %v339_v30  ;;  %v409_v49 = vadd.f32 %v394_v42, %v377_v37  ;;  %v416_v60 = vmul.f32 0.01, %v408_v51  ;;  %v423_v5 = vmax.f32 %v407_v53, %v415_v62 }
  0xe4   : > { %v341_v32 = vpop.f32.mrf.mxu0 }
  0xe5   : > { %v379_v34 = vmul.f32 %v367_v26, %v341_v32  ;;  %v410_v47 = vadd.f32 %v399_v31, %v378_v35  ;;  %v417_v58 = vmul.f32 0.01, %v409_v49  ;;  %v424_v4 = vmax.f32 %v408_v51, %v416_v60 }
  0xe6   : > { %v345_v36 = vpop.f32.mrf.mxu0 }
  0xe7   : > { %v380_v38 = vmul.f32 %v372_v22, %v345_v36  ;;  %v411_v43 = vadd.f32 %v399_v31, %v379_v34  ;;  %v418_v57 = vmul.f32 0.01, %v410_v47  ;;  %v425_v3 = vmax.f32 %v409_v49, %v417_v58 }
  0xe8   : > { %v347_v40 = vpop.f32.mrf.mxu0 }
  0xe9   : > { %v412_v44 = vadd.f32 %v404_v23, %v380_v38  ;;  %v381_v45 = vmul.f32 %v372_v22, %v347_v40  ;;  %v419_v54 = vmul.f32 0.01, %v411_v43  ;;  %v426_v2 = vmax.f32 %v410_v47, %v418_v57 }
  0xeb   : > { %v413_v50 = vadd.f32 %v404_v23, %v381_v45  ;;  %v420_v52 = vmul.f32 0.01, %v412_v44  ;;  %v427_v63 = vmax.f32 %v411_v43, %v419_v54 }
  0xed   : > { %v421_v55 = vmul.f32 0.01, %v413_v50  ;;  %v428_v61 = vmax.f32 %v412_v44, %v420_v52 }
  0xef   : > { %v429_v59 = vmax.f32 %v413_v50, %v421_v55 }
  0xf1   : > { %471 = vmatprep.subr.mxu1 %v429_v59 }
  0xf2   : > { %472 = vmatpush1.msra.mxu1 %v428_v61 }
  0xf3   : > { %473 = vmatprep.subr.mxu1 %v427_v63 }
  0xf4   : > { %474 = vmatpush1.msra.mxu1 %v426_v2 }
  0xf5   : > { %475 = vmatprep.subr.mxu1 %v425_v3 }
  0xf6   : > { %476 = vmatpush1.msra.mxu1 %v424_v4 }
  0xf7   : > { %477 = vmatprep.subr.mxu1 %v423_v5 }
  0xf8   : > { %478 = vmatpush1.msra.mxu1 %v422_v6 }
  0xf9   : > { %683 = vmatmul.mubr.msk.f32.vlgmr.msra.gmra.mxu1 %vm248_vm0, %v679_v7 }
  0xfa   : > { %517 = vmatprep.mubr.f32.mxu1 %v743_v0 }
  0xfd   : > { %684 = vmatmul.mubr.msk.f32.gmra.mxu1 %vm248_vm0, %v680_v8 }
  0xfe   : > { %523 = vmatprep.mubr.f32.mxu1 %v743_v0 }
 0x101   : > { %685 = vmatmul.mubr.msk.f32.gmra.mxu1 %vm248_vm0, %v681_v9 }
 0x102   : > { %529 = vmatprep.mubr.f32.mxu1 %v743_v0 }
 0x105   : > { %686 = vmatmul.mubr.msk.f32.gmra.mxu1 %vm248_vm0, %v682_v10 }
 0x1b9   : > { %v513_v11 = vpop.f32.mrf.mxu1 }
 0x1ba   : > { %v536_v13 = vmul.f32 %v513_v11, %v513_v11 }
 0x1bb   : > { %v515_v12 = vpop.f32.mrf.mxu1 }
 0x1bc   : > { %v537_v14 = vmul.f32 %v515_v12, %v515_v12  ;;  %v544_v15 = vadd.f32 %v515_v12, %v513_v11 }
 0x1bd   : > { %v519_v16 = vpop.f32.mrf.mxu1 }
 0x1be   : > { %545 = vadd.xlane.f32.xlu0 %v544_v15  ;;  %v556_v17 = vadd.f32 %v537_v14, %v536_v13  ;;  %v538_v19 = vmul.f32 %v519_v16, %v519_v16 }
 0x1bf   : > { %v521_v18 = vpop.f32.mrf.mxu1 }
 0x1c0   : > { %v539_v20 = vmul.f32 %v521_v18, %v521_v18  ;;  %557 = vadd.xlane.f32.xlu1 %v556_v17  ;;  %v547_v22 = vadd.f32 %v521_v18, %v519_v16 }
 0x1c1   : > { %v525_v21 = vpop.f32.mrf.mxu1 }
 0x1c2   : > { %v540_v0 = vmul.f32 %v525_v21, %v525_v21  ;;  %v559_v23 = vadd.f32 %v539_v20, %v538_v19 }
 0x1c3   : > { %v527_v24 = vpop.f32.mrf.mxu1 }
 0x1c4   : > { %v541_v25 = vmul.f32 %v527_v24, %v527_v24  ;;  %548 = vadd.xlane.f32.xlu1 %v547_v22  ;;  %560 = vadd.xlane.f32.xlu0 %v559_v23  ;;  %v550_v27 = vadd.f32 %v527_v24, %v525_v21 }
 0x1c5   : > { %v531_v26 = vpop.f32.mrf.mxu1 }
 0x1c6   : > { %v562_v28 = vadd.f32 %v541_v25, %v540_v0  ;;  %v542_v30 = vmul.f32 %v531_v26, %v531_v26 }
 0x1c7   : > { %v533_v29 = vpop.f32.mrf.mxu1 }
 0x1c8   : > { %551 = vadd.xlane.f32.xlu0 %v550_v27  ;;  %563 = vadd.xlane.f32.xlu1 %v562_v28  ;;  %v543_v31 = vmul.f32 %v533_v29, %v533_v29  ;;  %v553_v32 = vadd.f32 %v533_v29, %v531_v26 }
 0x1ca   : > { %v565_v33 = vadd.f32 %v543_v31, %v542_v30 }
 0x1cc   : > { %554 = vadd.xlane.f32.xlu0 %v553_v32 }
 0x1d0   : > { %566 = vadd.xlane.f32.xlu0 %v565_v33 }
 0x247   : > { %v546_v34 = vpop.xlane.xlu0 %545 }
 0x248   : > { %569 = vst.msk [vmem:[%s235_s10] sm:$0xff] %vm568_vm1, %v546_v34 }
 0x249   : > { %v558_v35 = vpop.xlane.xlu1 %557 }
 0x24a   : > { %573 = vst.msk [vmem:[%s235_s10 + $0x20] sm:$0xff] %vm568_vm1, %v558_v35 }
 0x24d   : > { %v549_v36 = vpop.xlane.xlu1 %548  ;;  %v561_v37 = vpop.xlane.xlu0 %560 }
 0x24e   : > { %570 = vst.msk [vmem:[%s235_s10 + $0x8] sm:$0xff] %vm568_vm1, %v549_v36  ;;  %574 = vst.msk [vmem:[%s235_s10 + $0x28] sm:$0xff] %vm568_vm1, %v561_v37 }
 0x251   : > { %v552_v38 = vpop.xlane.xlu0 %551  ;;  %v564_v39 = vpop.xlane.xlu1 %563 }
 0x252   : > { %571 = vst.msk [vmem:[%s235_s10 + $0x10] sm:$0xff] %vm568_vm1, %v552_v38  ;;  %575 = vst.msk [vmem:[%s235_s10 + $0x30] sm:$0xff] %vm568_vm1, %v564_v39 }
 0x255   : > { %v555_v40 = vpop.xlane.xlu0 %554 }
 0x256   : > { %572 = vst.msk [vmem:[%s235_s10 + $0x18] sm:$0xff] %vm568_vm1, %v555_v40 }
 0x259   : > { %v567_v41 = vpop.xlane.xlu0 %566 }
 0x25a   : > { %576 = vst.msk [vmem:[%s235_s10 + $0x38] sm:$0xff] %vm568_vm1, %v567_v41 }
 0x25b PF: > { %s14_s17 = sadd.s32 1, %s741_s17   ;;  %s887_s15 = smov %s737_s16 }
 0x25c   : > { %p11_p5 = scmp.ge.s32.totalorder %s14_s17, 4   ;;  %s888_s16 = smov %s890_s18 }
 0x25e   :  { %13 = sbr.rel (!%p11_p5) target bundleno = 2 (0x2), region = 67 }

// kernel: temporal_causal_block.5
= control target key start
LH: loop header
LB: loop body
LE: loop exit
PB: predicated region body
PF: predicated region fallthrough
CT: control target
= control target key end

     0   :  { %s826_s15 = smov 0   ;;  %s828_s16 = smov 0   ;;  %s964_s0 = inlined_call_operand.vmem [shape: f32[2,32,256], index: 0, kind: input, shape index: {}]   ;;  %s965_s1 = inlined_call_operand.vmem [shape: f32[2,32,32], index: 1, kind: input, shape index: {}]   ;;  %s966_s2 = inlined_call_operand.vmem [shape: f32[2,32,1], index: 2, kind: input, shape index: {}]   ;;  %s967_s3 = inlined_call_operand.vmem [shape: f32[2,32,1], index: 3, kind: input, shape index: {}]   ;;  %s968_s4 = inlined_call_operand.vmem [shape: f32[2,32,256], index: 4, kind: output, shape index: {}]  }
   0x1   :  { %s830_s17 = smov 0  }
   0x2 LB: > { %s26_s18 = sadd.s32 1, %s793_s16  ;;  %p718_p0 = scmp.ge.s32.totalorder %s797_s17, 1  ;;  %s797_s17 = sphi %s830_s17, %s14_s17   ;;  %s793_s16 = sphi %s828_s16, %s970_s16   ;;  %s789_s15 = sphi %s826_s15, %s969_s15  }
   0x3   : > { %p28_p1 = scmp.ge.s32.totalorder %s26_s18, 2  ;;  %p183_p2 = scmp.lt.s32.totalorder %s797_s17, 3 }
   0x5   : > { %s972_s18 = smov (%p28_p1, %s26_s18), 0  ;;  %p184_p3 = pnand %p718_p0, %p183_p2 }
   0x6   : > { %p218_p4 = scmp.lt.s32.totalorder (!%p184_p3), %s789_s15, 1 }
   0x7   : > { %187 = sbr.rel (%p184_p3) target bundleno = 465 (0x1d1), region = 36 }
   0xc   : > { %v799_v0 = vmov 0.0   ;;  %v354_v1 = vld [vmem:[%s966_s2 + $0x18] sm:$0xff]  ;;  %s974_s15 = smov (!%p218_p4, %s789_s15), 1  ;;  %v800_v3 = vmov 0   ;;  %v353_v4 = vld [vmem:[%s966_s2 + $0x10] sm:$0xff]  ;;  %v352_v5 = vld [vmem:[%s966_s2 + $0x8] sm:$0xff] }
   0xd   : > { %326 = vmatprep.mubr.f32.mxu0 %v799_v0  ;;  %v386_v2 = vld [vmem:[%s967_s3 + $0x18] sm:$0xff]  ;;  %512 = vmatprep.mubr.f32.mxu1 %v799_v0  ;;  %s745_s23 = sshll.u32 %s974_s15, 6  ;;  %v385_v11 = vld [vmem:[%s967_s3 + $0x10] sm:$0xff]  ;;  %v351_v13 = vld [vmem:[%s966_s2] sm:$0xff]  ;;  %vm249_vm0 = vcmask 261120  }
   0xe   : > { %773 = vset.pattern.permute.xlu0 %v800_v3  ;;  %774 = vset.pattern.permute.xlu1 %v800_v3  ;;  %s225_s28 = scalar_lea.vmem %s964_s0, %s745_s23  ;;  %v245_v16 = vld [vmem:[%s965_s1] sm:$0xff]  ;;  %v384_v17 = vld [vmem:[%s967_s3 + $0x8] sm:$0xff]  ;;  %v247_v22 = vld [vmem:[%s965_s1 + $0x10] sm:$0xff]  ;;  %s945_s5 = scalar_lea.vmem %s968_s4, %s745_s23 }
   0xf   : > { %372 = vperm.xlu0 %773, %v354_v1   ;;  %404 = vperm.xlu1 %774, %v386_v2   ;;  %v244_v6 = vld [vmem:[%s225_s28 + $0x38] sm:$0xff]  ;;  %v243_v7 = vld [vmem:[%s225_s28 + $0x30] sm:$0xff]  ;;  %v242_v8 = vld [vmem:[%s225_s28 + $0x28] sm:$0xff] }
  0x10   : > { %286 = vmatprep.subr.mxu0 %v244_v6  ;;  %v241_v9 = vld [vmem:[%s225_s28 + $0x20] sm:$0xff]  ;;  %v240_v10 = vld [vmem:[%s225_s28 + $0x18] sm:$0xff]  ;;  %v239_v12 = vld [vmem:[%s225_s28 + $0x10] sm:$0xff] }
  0x11   : > { %287 = vmatpush1.msra.mxu0 %v243_v7  ;;  %v238_v14 = vld [vmem:[%s225_s28 + $0x8] sm:$0xff]  ;;  %v237_v15 = vld [vmem:[%s225_s28] sm:$0xff]  ;;  %v737_v23 = vld [vmem:[%s966_s2 + $0x30] sm:$0xff] }
  0x12   : > { %288 = vmatprep.subr.mxu0 %v242_v8  ;;  %v383_v18 = vld [vmem:[%s967_s3] sm:$0xff]  ;;  %v246_v19 = vld [vmem:[%s965_s1 + $0x8] sm:$0xff]  ;;  %v738_v24 = vld [vmem:[%s966_s2 + $0x38] sm:$0xff] }
  0x13   : > { %367 = vperm.xlu0 %773, %v353_v4   ;;  %362 = vperm.xlu1 %774, %v352_v5   ;;  %v735_v20 = vld [vmem:[%s966_s2 + $0x20] sm:$0xff]  ;;  %v736_v21 = vld [vmem:[%s966_s2 + $0x28] sm:$0xff]  ;;  %v248_v25 = vld [vmem:[%s965_s1 + $0x18] sm:$0xff] }
  0x14   : > { %289 = vmatpush1.msra.mxu0 %v241_v9  ;;  %v739_v26 = vld [vmem:[%s967_s3 + $0x20] sm:$0xff]  ;;  %v740_v27 = vld [vmem:[%s967_s3 + $0x28] sm:$0xff]  ;;  %v741_v28 = vld [vmem:[%s967_s3 + $0x30] sm:$0xff] }
  0x15   : > { %290 = vmatprep.subr.mxu0 %v240_v10  ;;  %v742_v29 = vld [vmem:[%s967_s3 + $0x38] sm:$0xff] }
  0x16   : > { %291 = vmatpush1.msra.mxu0 %v239_v12 }
  0x17   : > { %399 = vperm.xlu0 %773, %v385_v11   ;;  %357 = vperm.xlu1 %774, %v351_v13  }
  0x18   : > { %292 = vmatprep.subr.mxu0 %v238_v14 }
  0x19   : > { %293 = vmatpush1.msra.mxu0 %v237_v15  ;;  %v727_v15 = vld [vmem:[%s965_s1 + $0x20] sm:$0xff] }
  0x1a   : > { %723 = vmatmul.mubr.msk.f32.vlgmr.msra.gmra.mxu0 %vm249_vm0, %v245_v16  ;;  %v728_v16 = vld [vmem:[%s965_s1 + $0x28] sm:$0xff] }
  0x1b   : > { %394 = vperm.xlu0 %773, %v384_v17   ;;  %332 = vmatprep.mubr.f32.mxu0 %v799_v0  ;;  %v729_v17 = vld [vmem:[%s965_s1 + $0x30] sm:$0xff] }
  0x1c   : > { %389 = vperm.xlu1 %774, %v383_v18   ;;  %v730_v18 = vld [vmem:[%s965_s1 + $0x38] sm:$0xff] }
  0x1e   : > { %724 = vmatmul.mubr.msk.f32.gmra.mxu0 %vm249_vm0, %v246_v19 }
  0x1f   : > { %544 = vperm.xlu0 %773, %v735_v20   ;;  %338 = vmatprep.mubr.f32.mxu0 %v799_v0 }
  0x20   : > { %549 = vperm.xlu1 %774, %v736_v21  }
  0x22   : > { %725 = vmatmul.mubr.msk.f32.gmra.mxu0 %vm249_vm0, %v247_v22 }
  0x23   : > { %554 = vperm.xlu0 %773, %v737_v23   ;;  %344 = vmatprep.mubr.f32.mxu0 %v799_v0 }
  0x24   : > { %559 = vperm.xlu1 %774, %v738_v24  }
  0x26   : > { %726 = vmatmul.mubr.msk.f32.gmra.mxu0 %vm249_vm0, %v248_v25 }
  0x27   : > { %577 = vperm.xlu0 %773, %v739_v26  }
  0x28   : > { %582 = vperm.xlu1 %774, %v740_v27  }
  0x2b   : > { %587 = vperm.xlu0 %773, %v741_v28  }
  0x2c   : > { %592 = vperm.xlu1 %774, %v742_v29  }
  0x8a   : > { %v373_v30 = vpop.permute.xlu0 %372  ;;  %v405_v31 = vpop.permute.xlu1 %404 }
  0x8e   : > { %v368_v34 = vpop.permute.xlu0 %367  ;;  %v363_v36 = vpop.permute.xlu1 %362 }
  0x92   : > { %v400_v39 = vpop.permute.xlu0 %399  ;;  %v358_v42 = vpop.permute.xlu1 %357 }
  0x96   : > { %v395_v53 = vpop.permute.xlu0 %394 }
  0x97   : > { %v390_v58 = vpop.permute.xlu1 %389 }
  0x9a   : > { %v545_v19 = vpop.permute.xlu0 %544 }
  0x9b   : > { %v550_v20 = vpop.permute.xlu1 %549 }
  0x9e   : > { %v555_v21 = vpop.permute.xlu0 %554 }
  0x9f   : > { %v560_v22 = vpop.permute.xlu1 %559 }
  0xa2   : > { %v578_v25 = vpop.permute.xlu0 %577 }
  0xda   : > { %v328_v32 = vpop.f32.mrf.mxu0 }
  0xdb   : > { %v375_v54 = vmul.f32 %v358_v42, %v328_v32  ;;  %v583_v32 = vpop.permute.xlu1 %582 }
  0xdc   : > { %v330_v33 = vpop.f32.mrf.mxu0 }
  0xdd   : > { %v376_v49 = vmul.f32 %v358_v42, %v330_v33  ;;  %v407_v1 = vadd.f32 %v390_v58, %v375_v54 }
  0xde   : > { %v334_v35 = vpop.f32.mrf.mxu0 }
  0xdf   : > { %v377_v47 = vmul.f32 %v363_v36, %v334_v35  ;;  %v408_v61 = vadd.f32 %v390_v58, %v376_v49  ;;  %v415_v9 = vmul.f32 0.01, %v407_v1  ;;  %v593_v54 = vpop.permute.xlu1 %592 }
  0xe0   : > { %v336_v37 = vpop.f32.mrf.mxu0 }
  0xe1   : > { %v378_v45 = vmul.f32 %v363_v36, %v336_v37  ;;  %v409_v59 = vadd.f32 %v395_v53, %v377_v47  ;;  %v416_v7 = vmul.f32 0.01, %v408_v61  ;;  %v423_v14 = vmax.f32 %v407_v1, %v415_v9 }
  0xe2   : > { %v340_v38 = vpop.f32.mrf.mxu0 }
  0xe3   : > { %v379_v43 = vmul.f32 %v368_v34, %v340_v38  ;;  %v410_v56 = vadd.f32 %v395_v53, %v378_v45  ;;  %v417_v5 = vmul.f32 0.01, %v409_v59  ;;  %v424_v13 = vmax.f32 %v408_v61, %v416_v7 }
  0xe4   : > { %v342_v40 = vpop.f32.mrf.mxu0 }
  0xe5   : > { %v380_v41 = vmul.f32 %v368_v34, %v342_v40  ;;  %v411_v55 = vadd.f32 %v400_v39, %v379_v43  ;;  %v418_v3 = vmul.f32 0.01, %v410_v56  ;;  %v425_v12 = vmax.f32 %v409_v59, %v417_v5  ;;  %v588_v43 = vpop.permute.xlu0 %587 }
  0xe6   : > { %v346_v44 = vpop.f32.mrf.mxu0 }
  0xe7   : > { %v381_v46 = vmul.f32 %v373_v30, %v346_v44  ;;  %v412_v50 = vadd.f32 %v400_v39, %v380_v41  ;;  %v419_v2 = vmul.f32 0.01, %v411_v55  ;;  %v426_v11 = vmax.f32 %v410_v56, %v418_v3 }
  0xe8   : > { %v348_v48 = vpop.f32.mrf.mxu0 }
  0xe9   : > { %v413_v51 = vadd.f32 %v405_v31, %v381_v46  ;;  %v382_v52 = vmul.f32 %v373_v30, %v348_v48  ;;  %v420_v62 = vmul.f32 0.01, %v412_v50  ;;  %v427_v10 = vmax.f32 %v411_v55, %v419_v2 }
  0xeb   : > { %v414_v57 = vadd.f32 %v405_v31, %v382_v52  ;;  %v421_v60 = vmul.f32 0.01, %v413_v51  ;;  %v428_v8 = vmax.f32 %v412_v50, %v420_v62 }
  0xed   : > { %v422_v63 = vmul.f32 0.01, %v414_v57  ;;  %v429_v6 = vmax.f32 %v413_v51, %v421_v60 }
  0xef   : > { %v430_v4 = vmax.f32 %v414_v57, %v422_v63 }
  0xf1   : > { %472 = vmatprep.subr.mxu1 %v430_v4 }
  0xf2   : > { %473 = vmatpush1.msra.mxu1 %v429_v6 }
  0xf3   : > { %474 = vmatprep.subr.mxu1 %v428_v8 }
  0xf4   : > { %475 = vmatpush1.msra.mxu1 %v427_v10 }
  0xf5   : > { %476 = vmatprep.subr.mxu1 %v426_v11 }
  0xf6   : > { %477 = vmatpush1.msra.mxu1 %v425_v12 }
  0xf7   : > { %478 = vmatprep.subr.mxu1 %v424_v13 }
  0xf8   : > { %479 = vmatpush1.msra.mxu1 %v423_v14 }
  0xf9   : > { %731 = vmatmul.mubr.msk.f32.vlgmr.msra.gmra.mxu1 %vm249_vm0, %v727_v15 }
  0xfa   : > { %518 = vmatprep.mubr.f32.mxu1 %v799_v0 }
  0xfd   : > { %732 = vmatmul.mubr.msk.f32.gmra.mxu1 %vm249_vm0, %v728_v16 }
  0xfe   : > { %524 = vmatprep.mubr.f32.mxu1 %v799_v0 }
 0x101   : > { %733 = vmatmul.mubr.msk.f32.gmra.mxu1 %vm249_vm0, %v729_v17 }
 0x102   : > { %530 = vmatprep.mubr.f32.mxu1 %v799_v0 }
 0x105   : > { %734 = vmatmul.mubr.msk.f32.gmra.mxu1 %vm249_vm0, %v730_v18 }
 0x1b9   : > { %v514_v23 = vpop.f32.mrf.mxu1 }
 0x1ba   : > { %v562_v24 = vmul.f32 %v545_v19, %v514_v23 }
 0x1bb   : > { %v516_v26 = vpop.f32.mrf.mxu1 }
 0x1bc   : > { %v595_v27 = vadd.f32 %v578_v25, %v562_v24  ;;  %v563_v28 = vmul.f32 %v545_v19, %v516_v26 }
 0x1bd   : > { %v520_v29 = vpop.f32.mrf.mxu1 }
 0x1be   : > { %v603_v30 = vmul.f32 0.01, %v595_v27  ;;  %v596_v0 = vadd.f32 %v578_v25, %v563_v28  ;;  %v564_v31 = vmul.f32 %v550_v20, %v520_v29 }
 0x1bf   : > { %v522_v33 = vpop.f32.mrf.mxu1 }
 0x1c0   : > { %v611_v34 = vmax.f32 %v595_v27, %v603_v30  ;;  %v604_v35 = vmul.f32 0.01, %v596_v0  ;;  %v597_v36 = vadd.f32 %v583_v32, %v564_v31  ;;  %v565_v37 = vmul.f32 %v550_v20, %v522_v33 }
 0x1c1   : > { %v526_v38 = vpop.f32.mrf.mxu1 }
 0x1c2   : > { %619 = vst [vmem:[%s945_s5] sm:$0xff] %v611_v34  ;;  %v612_v39 = vmax.f32 %v596_v0, %v604_v35  ;;  %v605_v40 = vmul.f32 0.01, %v597_v36  ;;  %v598_v41 = vadd.f32 %v583_v32, %v565_v37  ;;  %v566_v42 = vmul.f32 %v555_v21, %v526_v38 }
 0x1c3   : > { %v528_v44 = vpop.f32.mrf.mxu1 }
 0x1c4   : > { %620 = vst [vmem:[%s945_s5 + $0x8] sm:$0xff] %v612_v39  ;;  %v613_v45 = vmax.f32 %v597_v36, %v605_v40  ;;  %v606_v46 = vmul.f32 0.01, %v598_v41  ;;  %v599_v47 = vadd.f32 %v588_v43, %v566_v42  ;;  %v567_v48 = vmul.f32 %v555_v21, %v528_v44 }
 0x1c5   : > { %v532_v49 = vpop.f32.mrf.mxu1 }
 0x1c6   : > { %621 = vst [vmem:[%s945_s5 + $0x10] sm:$0xff] %v613_v45  ;;  %v614_v50 = vmax.f32 %v598_v41, %v606_v46  ;;  %v607_v51 = vmul.f32 0.01, %v599_v47  ;;  %v600_v52 = vadd.f32 %v588_v43, %v567_v48  ;;  %v568_v53 = vmul.f32 %v560_v22, %v532_v49 }
 0x1c7   : > { %v534_v55 = vpop.f32.mrf.mxu1 }
 0x1c8   : > { %622 = vst [vmem:[%s945_s5 + $0x18] sm:$0xff] %v614_v50  ;;  %v615_v56 = vmax.f32 %v599_v47, %v607_v51  ;;  %v608_v57 = vmul.f32 0.01, %v600_v52  ;;  %v601_v58 = vadd.f32 %v593_v54, %v568_v53  ;;  %v569_v59 = vmul.f32 %v560_v22, %v534_v55 }
 0x1ca   : > { %623 = vst [vmem:[%s945_s5 + $0x20] sm:$0xff] %v615_v56  ;;  %v616_v60 = vmax.f32 %v600_v52, %v608_v57  ;;  %v609_v61 = vmul.f32 0.01, %v601_v58  ;;  %v602_v62 = vadd.f32 %v593_v54, %v569_v59 }
 0x1cc   : > { %624 = vst [vmem:[%s945_s5 + $0x28] sm:$0xff] %v616_v60  ;;  %v617_v63 = vmax.f32 %v601_v58, %v609_v61  ;;  %v610_v1 = vmul.f32 0.01, %v602_v62 }
 0x1ce   : > { %625 = vst [vmem:[%s945_s5 + $0x30] sm:$0xff] %v617_v63  ;;  %v618_v2 = vmax.f32 %v602_v62, %v610_v1 }
 0x1d0   : > { %626 = vst [vmem:[%s945_s5 + $0x38] sm:$0xff] %v618_v2 }
 0x1d1 PF: > { %s14_s17 = sadd.s32 1, %s797_s17   ;;  %s969_s15 = smov %s793_s16 }
 0x1d2   : > { %p11_p5 = scmp.ge.s32.totalorder %s14_s17, 4   ;;  %s970_s16 = smov %s972_s18 }
 0x1d4   :  { %13 = sbr.rel (!%p11_p5) target bundleno = 2 (0x2), region = 69 }

</bundles_post_ra>
